<compile_context>
chip_gen: v6e
topology: v6e:2x2x1
jax: 0.10.0
libtpu: 0.0.40
codegen_flags: <defaults>
</compile_context>

<pallas_src>
import math

import jax
import jax.numpy as jnp
from jax.experimental import pallas as pl
from jax.experimental.pallas import tpu as pltpu

HID = 32        # logical hidden width of MLP_SIM
HID_PAD = 128   # lane-padded hidden width used inside the kernel


def _round_up(n, m):
    return -(-n // m) * m


def mlp_sim_kernel(x_ref, w1_ref, b1_ref, w2_ref, b2_ref, o_ref):
    # Layer 1: in -> 32 (padded to 128 lanes), ReLU.  bf16 MXU inputs, f32 acc.
    x = x_ref[...]
    h = jnp.dot(x.astype(jnp.bfloat16), w1_ref[...],
                preferred_element_type=jnp.float32) + b1_ref[...]
    h = jnp.maximum(h, 0.0)

    # Layer 2: 32 (padded) -> out_pad, no activation.
    out = jnp.dot(h.astype(jnp.bfloat16), w2_ref[...],
                  preferred_element_type=jnp.float32) + b2_ref[...]

    # Store only the logical output columns (masked vst is free; HBM isn't).
    o_ref[...] = out[:, :o_ref.shape[1]].astype(o_ref.dtype)


def prepare_params(params, in_dim):
    """Hoisted out of the hot path: pad/cast weights once, reuse across calls."""
    out_features = params["w2"].shape[1]
    out_pad = _round_up(out_features, 128)

    w1 = jnp.zeros((in_dim, HID_PAD), jnp.bfloat16)
    w1 = w1.at[:, :HID].set(params["w1"].astype(jnp.bfloat16))
    b1 = jnp.zeros((1, HID_PAD), jnp.float32)
    b1 = b1.at[:, :HID].set(params["b1"].reshape(1, -1))
    w2 = jnp.zeros((HID_PAD, out_pad), jnp.bfloat16)
    w2 = w2.at[:HID, :out_features].set(params["w2"].astype(jnp.bfloat16))
    b2 = jnp.zeros((1, out_pad), jnp.float32)
    b2 = b2.at[:, :out_features].set(params["b2"].reshape(1, -1))
    return {"w1": w1, "b1": b1, "w2": w2, "b2": b2,
            "out_features": out_features, "out_pad": out_pad}


def _choose_tb(B, in_dim, out_features):
    """Batch tile from a VMEM budget; only sublane-8 alignment matters (mem-bound)."""
    # ~8 MiB for the double-buffered x + out tiles: comfortably under the
    # default scoped VMEM limit on every generation (16 MiB v5e, 32 MiB
    # v6e/v7x; 64 MiB physical per TC on v7x).
    budget = 8 * 1024 * 1024
    bytes_per_row = (in_dim * 4 + out_features * 4) * 2  # x + out, double-buffered
    tb = min(budget // bytes_per_row, 4096)
    tb = max((tb // 8) * 8, 8)
    if B <= tb:
        # Small / moderate batch: don't over-allocate, and when there's enough
        # work give the grid >=2 steps so v7x can use both TensorCores and the
        # pipeline has something to overlap.
        if B > 16:
            tb = _round_up(pl.cdiv(B, 2), 8)
        else:
            tb = _round_up(B, 8)
    return tb


def mlp_sim_forward(x, prepared):
    """MLP_SIM forward: x [B, in_dim] float32 -> [B, out_features] float32."""
    B, in_dim = x.shape
    out_features = prepared["out_features"]
    out_pad = prepared["out_pad"]
    w1, b1, w2, b2 = prepared["w1"], prepared["b1"], prepared["w2"], prepared["b2"]

    TB = _choose_tb(B, in_dim, out_features)
    grid = (pl.cdiv(B, TB),)   # ragged tail block is clamped by Pallas

    flops = 2 * B * (in_dim * HID_PAD + HID_PAD * out_pad)
    bytes_accessed = (B * in_dim * 4 + B * out_features * 4 +
                      w1.size * 2 + w2.size * 2 + (b1.size + b2.size) * 4)

    out = pl.pallas_call(
        mlp_sim_kernel,
        out_shape=jax.ShapeDtypeStruct((B, out_features), jnp.float32),
        grid=grid,
        in_specs=[
            pl.BlockSpec((TB, in_dim), lambda i: (i, 0)),        # x: tiled over batch
            pl.BlockSpec((in_dim, HID_PAD), lambda i: (0, 0)),   # w1: VMEM-resident
            pl.BlockSpec((1, HID_PAD), lambda i: (0, 0)),        # b1
            pl.BlockSpec((HID_PAD, out_pad), lambda i: (0, 0)),  # w2
            pl.BlockSpec((1, out_pad), lambda i: (0, 0)),        # b2
        ],
        out_specs=pl.BlockSpec((TB, out_features), lambda i: (i, 0)),
        compiler_params=pltpu.CompilerParams(
            dimension_semantics=("parallel",)),
        cost_estimate=pl.CostEstimate(
            flops=flops, transcendentals=0, bytes_accessed=bytes_accessed),
    )(x, w1, b1, w2, b2)

    return out


def init_params(key, in_dim, out_features):
    """Deterministic PyTorch-style init; weights stored [in, out]."""
    sizes = [(in_dim, HID), (HID, out_features)]
    params = {}
    for i, (fin, fout) in enumerate(sizes, start=1):
        key, kw, kb = jax.random.split(key, 3)
        bound = 1.0 / math.sqrt(fin)  # PyTorch nn.Linear default uniform init
        params[f"w{i}"] = jax.random.uniform(
            kw, (fin, fout), jnp.float32, minval=-bound, maxval=bound)
        params[f"b{i}"] = jax.random.uniform(
            kb, (fout,), jnp.float32, minval=-bound, maxval=bound)
    return params


def reference_forward(x, params):
    """Pure-JAX reference matching the kernel's bf16-in / f32-accumulate math."""
    w1 = params["w1"].astype(jnp.bfloat16)
    w2 = params["w2"].astype(jnp.bfloat16)
    h = jnp.dot(x.astype(jnp.bfloat16), w1,
                preferred_element_type=jnp.float32) + params["b1"]
    h = jnp.maximum(h, 0.0)
    return jnp.dot(h.astype(jnp.bfloat16), w2,
                   preferred_element_type=jnp.float32) + params["b2"]


if __name__ == "__main__":
    key = jax.random.PRNGKey(0)

    # Flat observation space, e.g. env.single_observation_space.shape == (16,)
    batch = 8
    in_dim = 16
    out_features = 24

    key, kx, kp = jax.random.split(key, 3)
    x = jax.random.normal(kx, (batch, in_dim), jnp.float32)
    params = init_params(kp, in_dim, out_features)

    prepared = prepare_params(params, in_dim)   # once, outside the hot path
    out = mlp_sim_forward(x, prepared)
    out = jax.block_until_ready(out)

    ref = reference_forward(x, params)
    assert out.shape == (batch, out_features)
    assert jnp.allclose(out, ref, atol=1e-2, rtol=1e-2), (
        f"max abs err={jnp.max(jnp.abs(out - ref))}")

    print("KERNEL_OK")
</pallas_src>

<mosaic_0001>
module attributes {stable_mosaic.version = 11 : i64} {
  func.func @mlp_sim_kernel(%arg0: i32, %arg1: memref<8x16xf32, #tpu.memory_space<vmem>>, %arg2: memref<16x128xbf16, #tpu.memory_space<vmem>>, %arg3: memref<1x128xf32, #tpu.memory_space<vmem>>, %arg4: memref<128x128xbf16, #tpu.memory_space<vmem>>, %arg5: memref<1x128xf32, #tpu.memory_space<vmem>>, %arg6: memref<8x24xf32, #tpu.memory_space<vmem>>) attributes {dimension_semantics = [#tpu.dimension_semantics<parallel>], iteration_bounds = array<i64: 1>, scalar_prefetch = 0 : i64, scratch_operands = 0 : i64, tpu.core_type = #tpu.core_type<tc>, window_params = [{transform_indices = @transform_0, window_bounds = array<i64: 8, 16>}, {pipeline_mode = #tpu.pipeline_mode<synchronous>, transform_indices = @transform_1, window_bounds = array<i64: 16, 128>}, {pipeline_mode = #tpu.pipeline_mode<synchronous>, transform_indices = @transform_2, window_bounds = array<i64: 1, 128>}, {pipeline_mode = #tpu.pipeline_mode<synchronous>, transform_indices = @transform_3, window_bounds = array<i64: 128, 128>}, {pipeline_mode = #tpu.pipeline_mode<synchronous>, transform_indices = @transform_4, window_bounds = array<i64: 1, 128>}, {transform_indices = @transform_5, window_bounds = array<i64: 8, 24>}]} {
    %c0 = arith.constant 0 : index
    %c0_0 = arith.constant 0 : index
    %0 = vector.load %arg1[%c0, %c0_0] : memref<8x16xf32, #tpu.memory_space<vmem>>, vector<8x16xf32>
    %1 = arith.truncf %0 : vector<8x16xf32> to vector<8x16xbf16>
    %c0_1 = arith.constant 0 : index
    %c0_2 = arith.constant 0 : index
    %2 = vector.load %arg2[%c0_1, %c0_2] : memref<16x128xbf16, #tpu.memory_space<vmem>>, vector<16x128xbf16>
    %cst = arith.constant dense<0.000000e+00> : vector<8x128xf32>
    %3 = tpu.matmul %1, %2, %cst {dimension_numbers = #tpu.dot_dimension_numbers<[1], [0], [0], [1], [0, 0, 1, 1], [], []>} : vector<8x16xbf16>, vector<16x128xbf16>, vector<8x128xf32> -> vector<8x128xf32>
    %c0_3 = arith.constant 0 : index
    %c0_4 = arith.constant 0 : index
    %4 = vector.load %arg3[%c0_3, %c0_4] : memref<1x128xf32, #tpu.memory_space<vmem>>, vector<1x128xf32>
    %5 = vector.broadcast %4 : vector<1x128xf32> to vector<8x128xf32>
    %6 = arith.addf %3, %5 : vector<8x128xf32>
    %cst_5 = arith.constant 0.000000e+00 : f32
    %7 = vector.broadcast %cst_5 : f32 to vector<8x128xf32>
    %8 = arith.maximumf %6, %7 : vector<8x128xf32>
    %9 = arith.truncf %8 : vector<8x128xf32> to vector<8x128xbf16>
    %c0_6 = arith.constant 0 : index
    %c0_7 = arith.constant 0 : index
    %10 = vector.load %arg4[%c0_6, %c0_7] : memref<128x128xbf16, #tpu.memory_space<vmem>>, vector<128x128xbf16>
    %cst_8 = arith.constant dense<0.000000e+00> : vector<8x128xf32>
    %11 = tpu.matmul %9, %10, %cst_8 {dimension_numbers = #tpu.dot_dimension_numbers<[1], [0], [0], [1], [0, 0, 1, 1], [], []>} : vector<8x128xbf16>, vector<128x128xbf16>, vector<8x128xf32> -> vector<8x128xf32>
    %c0_9 = arith.constant 0 : index
    %c0_10 = arith.constant 0 : index
    %12 = vector.load %arg5[%c0_9, %c0_10] : memref<1x128xf32, #tpu.memory_space<vmem>>, vector<1x128xf32>
    %13 = vector.broadcast %12 : vector<1x128xf32> to vector<8x128xf32>
    %14 = arith.addf %11, %13 : vector<8x128xf32>
    %15 = vector.extract_strided_slice %14 {offsets = [0, 0], sizes = [8, 24], strides = [1, 1]} : vector<8x128xf32> to vector<8x24xf32>
    %c0_11 = arith.constant 0 : index
    %c0_12 = arith.constant 0 : index
    %16 = vector.load %arg6[%c0_11, %c0_12] : memref<8x24xf32, #tpu.memory_space<vmem>>, vector<8x24xf32>
    tpu.vector_store %arg6[%c0_11, %c0_12], %15 {strides = array<i32>} : memref<8x24xf32, #tpu.memory_space<vmem>>, vector<8x24xf32>,
    return
  }
  func.func @transform_0(%arg0: i32) -> (i32, i32) {
    %c0_i32 = arith.constant 0 : i32
    %c0_i32_0 = arith.constant 0 : i32
    return %arg0, %c0_i32 : i32, i32
  }
  func.func @transform_1(%arg0: i32) -> (i32, i32) {
    %c0_i32 = arith.constant 0 : i32
    %c0_i32_0 = arith.constant 0 : i32
    %c0_i32_1 = arith.constant 0 : i32
    return %c0_i32, %c0_i32_0 : i32, i32
  }
  func.func @transform_2(%arg0: i32) -> (i32, i32) {
    %c0_i32 = arith.constant 0 : i32
    %c0_i32_0 = arith.constant 0 : i32
    %c0_i32_1 = arith.constant 0 : i32
    return %c0_i32, %c0_i32_0 : i32, i32
  }
  func.func @transform_3(%arg0: i32) -> (i32, i32) {
    %c0_i32 = arith.constant 0 : i32
    %c0_i32_0 = arith.constant 0 : i32
    %c0_i32_1 = arith.constant 0 : i32
    return %c0_i32, %c0_i32_0 : i32, i32
  }
  func.func @transform_4(%arg0: i32) -> (i32, i32) {
    %c0_i32 = arith.constant 0 : i32
    %c0_i32_0 = arith.constant 0 : i32
    %c0_i32_1 = arith.constant 0 : i32
    return %c0_i32, %c0_i32_0 : i32, i32
  }
  func.func @transform_5(%arg0: i32) -> (i32, i32) {
    %c0_i32 = arith.constant 0 : i32
    %c0_i32_0 = arith.constant 0 : i32
    return %arg0, %c0_i32 : i32, i32
  }
}

</mosaic_0001>

<bundles_post_ra>
// kernel: tpu_custom_call.1
= control target key start
LH: loop header
LB: loop body
LE: loop exit
PB: predicated region body
PF: predicated region fallthrough
CT: control target
= control target key end

     0   :  { %10 = vsyncpa [#allocation3], 0  ;;  %s461_s0 = inlined_call_operand.hbm [shape: f32[8,16], index: 0, kind: input, shape index: {}]   ;;  %s462_s1 = inlined_call_operand.hbm [shape: bf16[16,128], index: 1, kind: input, shape index: {}]   ;;  %s463_s2 = inlined_call_operand.vmem [shape: f32[1,128], index: 2, kind: input, shape index: {}]   ;;  %s464_s3 = inlined_call_operand.hbm [shape: bf16[128,128], index: 3, kind: input, shape index: {}]   ;;  %s465_s4 = inlined_call_operand.vmem [shape: f32[1,128], index: 4, kind: input, shape index: {}]   ;;  %s466_s5 = inlined_call_operand.hbm [shape: f32[8,24], index: 5, kind: output, shape index: {}]  }
   0x1   :  { %11 = vsyncpa [#allocation6], 0 }
   0x2   :  { %12 = vsyncpa [#allocation4], 0  ;;  %s405_s18 = smov [#allocation5]  }
   0x3   :  { %s28_s19 = sshll.u32 %s405_s18, 4  ;;  %s29_s19 = int_to_ptr.vmem [resolvable:$true] %s28_s19 }
   0x4   :  { %s327_s20 = scalar_lea.vmem %s29_s19, 128  ;;  %p332_p1 = scmp.lt.s32.totalorder %s29_s19, %s29_s19 }
   0x5   :  { %p328_p0 = scmp.ne.s32.totalorder %s29_s19, %s327_s20  ;;  %p333_p2 = scmp.lt.s32.totalorder %s327_s20, %s327_s20 }
   0x7   :  { %p334_p3 = por %p333_p2, %p332_p1 }
   0x9   :  { %p335_p4 = pnand %p334_p3, %p328_p0 }
   0xb   :  { %338 = shalt.err (!%p335_p4)
}
   0xc   :  { %s406_s21 = smov 64   ;;  %s407_s22 = smov 4  }
   0xd   :  { %34 = dma.hbm_to_vmem [thread:$0]  %s462_s1, 128, %s29_s19, [#allocation6], %s406_s21, %s406_s21, %s407_s22  }
   0xe   :  { %s408_s25 = smov [#allocation2]   ;;  %s409_s27 = smov [#allocation7]  }
   0xf   :  { %s19_s26 = sshll.u32 %s408_s25, 4  ;;  %s42_s28 = sshll.u32 %s409_s27, 4  ;;  %s20_s26 = int_to_ptr.vmem [resolvable:$true] %s19_s26  ;;  %s43_s28 = int_to_ptr.vmem [resolvable:$true] %s42_s28 }
  0x10   :  { %s347_s29 = scalar_lea.vmem %s20_s26, 128  ;;  %p352_p6 = scmp.lt.s32.totalorder %s20_s26, %s20_s26 }
  0x11   :  { %p348_p5 = scmp.ne.s32.totalorder %s20_s26, %s347_s29  ;;  %p353_p7 = scmp.lt.s32.totalorder %s347_s29, %s347_s29 }
  0x13   :  { %p354_p8 = por %p353_p7, %p352_p6 }
  0x15   :  { %p355_p9 = pnand %p354_p8, %p348_p5 }
  0x17   :  { %358 = shalt.err (!%p355_p9)
}
  0x18   :  { %22 = dma.hbm_to_vmem [thread:$0]  %s461_s0, 128, %s20_s26, [#allocation3]  }
  0x19   :  { %s367_s7 = scalar_lea.vmem %s43_s28, 1024  ;;  %p372_p11 = scmp.lt.s32.totalorder %s43_s28, %s43_s28 }
  0x1a   :  { %p368_p10 = scmp.ne.s32.totalorder %s43_s28, %s367_s7  ;;  %p373_p12 = scmp.lt.s32.totalorder %s367_s7, %s367_s7 }
  0x1c   :  { %p374_p13 = por %p373_p12, %p372_p11 }
  0x1e   :  { %p375_p0 = pnand %p374_p13, %p368_p10 }
  0x20   :  { %378 = shalt.err (!%p375_p0)
}
  0x21   :  { %48 = dma.hbm_to_vmem [thread:$0]  %s464_s3, 1024, %s43_s28, [#allocation6], %s406_s21, %s406_s21, %s407_s22  }
  0x22   :  { %399 = dma.done.wait [#allocation3], 128  }
  0x23   :  { %400 = vsyncadd [#allocation3], 4294967168 }
  0x24   :  { %401 = dma.done.wait [#allocation6], 1152  }
  0x25   :  { %402 = vsyncadd [#allocation6], 4294966144  ;;  %v410_v0 = vmov 0.0   ;;  %vm411_vm0 = vmmov 0   ;;  %v310_v1 = vld [vmem:[#allocation5] sm:$0xff]   ;;  %v61_v2 = vld [vmem:[#allocation2] sm:$0xff] }
  0x26   :  { %276 = vmatprep.subr.bf16.mxu0 %v410_v0  ;;  %278 = vmatprep.mubr.msk.bf16.mxu0 %vm411_vm0, %v410_v0  ;;  %v62_v3 = vpack.c.bf16 %v61_v2, %v61_v2  ;;  %vm78_vm1 = vcmask 130048   ;;  %v311_v4 = vld [vmem:[#allocation7 + $0x38] sm:$0xff]   ;;  %v312_v5 = vld [vmem:[#allocation7 + $0x30] sm:$0xff]   ;;  %v313_v6 = vld [vmem:[#allocation7 + $0x28] sm:$0xff]   ;;  %s412_s11 = smov [#allocation8]   ;;  %vm235_vm2 = vcmask 195584  }
  0x27   :  { %282 = vmatprep.subr.bf16.mxu1 %v410_v0  ;;  %298 = vmatprep.mubr.msk.bf16.mxu1 %vm411_vm0, %v410_v0  ;;  %v314_v7 = vld [vmem:[#allocation7 + $0x20] sm:$0xff]   ;;  %v315_v8 = vld [vmem:[#allocation7 + $0x18] sm:$0xff]   ;;  %v316_v9 = vld [vmem:[#allocation7 + $0x10] sm:$0xff]   ;;  %s243_s12 = sshll.u32 %s412_s11, 4  ;;  %s244_s12 = int_to_ptr.vmem [resolvable:$true] %s243_s12 }
  0x28   :  { %277 = vmatpush3.bf16.msra.mxu0 %v310_v1  ;;  %283 = vmatpush3.bf16.msra.mxu1 %v311_v4  ;;  %v317_v10 = vld [vmem:[#allocation7 + $0x8] sm:$0xff]   ;;  %v318_v11 = vld [vmem:[#allocation7] sm:$0xff]   ;;  %v253_v12 = vld [vmem:[%s463_s2] ss:$0 sm:$0xff]  ;;  %s379_s2 = scalar_lea.vmem %s244_s12, 128  ;;  %p384_p2 = scmp.lt.s32.totalorder %s244_s12, %s244_s12 }
  0x29   :  { %284 = vmatprep.subr.bf16.mxu1 %v410_v0  ;;  %v256_v20 = vld [vmem:[%s465_s4] ss:$0 sm:$0xff]  ;;  %p380_p1 = scmp.ne.s32.totalorder %s244_s12, %s379_s2  ;;  %p385_p3 = scmp.lt.s32.totalorder %s379_s2, %s379_s2 }
  0x2b   :  { %279 = vmatmul.mubr.msk.bf16.vlgmr.msra.gmra.mxu0 %vm78_vm1, %v62_v3  ;;  %p386_p4 = por %p385_p3, %p384_p2 }
  0x2c   :  { %285 = vmatpush3.bf16.msra.mxu1 %v312_v5 }
  0x2d   :  { %286 = vmatprep.subr.bf16.mxu1 %v410_v0  ;;  %p387_p5 = pnand %p386_p4, %p380_p1 }
  0x30   :  { %287 = vmatpush3.bf16.msra.mxu1 %v313_v6 }
  0x31   :  { %288 = vmatprep.subr.bf16.mxu1 %v410_v0 }
  0x34   :  { %289 = vmatpush3.bf16.msra.mxu1 %v314_v7 }
  0x35   :  { %290 = vmatprep.subr.bf16.mxu1 %v410_v0 }
  0x38   :  { %291 = vmatpush3.bf16.msra.mxu1 %v315_v8 }
  0x39   :  { %292 = vmatprep.subr.bf16.mxu1 %v410_v0 }
  0x3c   :  { %293 = vmatpush3.bf16.msra.mxu1 %v316_v9 }
  0x3d   :  { %294 = vmatprep.subr.bf16.mxu1 %v410_v0 }
  0x40   :  { %295 = vmatpush3.bf16.msra.mxu1 %v317_v10 }
  0x41   :  { %296 = vmatprep.subr.bf16.mxu1 %v410_v0 }
  0x44   :  { %297 = vmatpush3.bf16.msra.mxu1 %v318_v11 }
  0xeb   :  { %v116_v13 = vpop.f32.mrf.mxu0 }
  0xec   :  { %v117_v14 = vadd.f32 %v253_v12, %v116_v13 }
  0xed   :  { %v280_v15 = vpop.f32.mrf.mxu0 }
  0xee   :  { %v122_v16 = vmax.f32 %v117_v14, 0.0 }
  0xef   :  { %v119_v17 = vpop.f32.mrf.mxu0 }
  0xf0   :  { %v123_v18 = vpack.c.bf16 %v122_v16, %v122_v16 }
  0xf1   :  { %v281_v19 = vpop.f32.mrf.mxu0 }
  0xf2   :  { %299 = vmatmul.mubr.bf16.vlgmr.msra.gmra.mxu1 %v123_v18 }
 0x1b2   :  { %v229_v21 = vpop.f32.mrf.mxu1 }
 0x1b3   :  { %v230_v22 = vadd.f32 %v256_v20, %v229_v21 }
 0x1b4   :  { %v300_v23 = vpop.f32.mrf.mxu1 }
 0x1b5   :  { %236 = vst.msk [vmem:[#allocation8] sm:$0xff] %vm235_vm2, %v230_v22 }
 0x1b6   :  { %v232_v24 = vpop.f32.mrf.mxu1 }
 0x1b7   :  { %390 = shalt.err (!%p387_p5)
}
 0x1b8   :  { %246 = dma.vmem_to_hbm [thread:$0]  %s244_s12, 128, %s466_s5, [#allocation4]   ;;  %v301_v25 = vpop.f32.mrf.mxu1 }
 0x1b9   :  { %403 = dma.done.wait [#allocation4], 128  }
 0x1ba   :  { %404 = vsyncadd [#allocation4], 4294967168 }
 0x1bb   :  { %250 = vsyncpa [#allocation3], 1 }
 0x1bc   :  { %251 = vsyncpa [#allocation6], 1 }
 0x1bd   :  { %252 = vsyncpa [#allocation4], 1 }

</bundles_post_ra>
